<compile_context>
chip_gen: v6e
topology: v6e:2x2x1
jax: 0.10.0
libtpu: 0.0.40
codegen_flags: <defaults>
</compile_context>

<pallas_src>
import functools

import jax
import jax.numpy as jnp
from jax.experimental import pallas as pl
from jax.experimental.pallas import tpu as pltpu


# --------------------------------------------------------------------------
# Kernels
# --------------------------------------------------------------------------
def _conv1_stats_kernel(x_ref, w_ref, a_ref, st_ref, *, ksize):
    # x_ref : (BT, Cin, Lp)   bf16  upsampled + conv-padded input rows
    # w_ref : (Cout, K*Cin)   bf16  tap-fused conv1 weight
    # a_ref : (BT, Cout, L1)  bf16  raw conv1 output (pre-BN)
    # st_ref: (1, Cout, 3)    f32   per-step stats: [sum, centered sumsq, L*rowmean^2]
    bt = x_ref.shape[0]
    cout, l1 = a_ref.shape[1], a_ref.shape[2]
    inv_l = 1.0 / float(l1)
    w = w_ref[...]
    s_acc = jnp.zeros((cout, 1), jnp.float32)
    c_acc = jnp.zeros((cout, 1), jnp.float32)
    q_acc = jnp.zeros((cout, 1), jnp.float32)
    for b in range(bt):                          # static unroll over the batch tile
        x = x_ref[b]                             # (Cin, Lp) bf16
        # im2col-lite: K shifted slices stacked on the contraction axis -> 1 MXU matmul.
        xcol = jnp.concatenate([x[:, t:t + l1] for t in range(ksize)], axis=0)
        a = jnp.dot(w, xcol, preferred_element_type=jnp.float32)   # (Cout, L1) f32
        a_ref[b] = a.astype(a_ref.dtype)         # bf16 to HBM; stats stay f32 below
        rs = jnp.sum(a, axis=1, keepdims=True)   # (Cout, 1)
        rm = rs * inv_l
        d = a - rm
        s_acc = s_acc + rs
        c_acc = c_acc + jnp.sum(d * d, axis=1, keepdims=True)
        q_acc = q_acc + rs * rm                  # == L * rowmean^2
    st_ref[0] = jnp.concatenate([s_acc, c_acc, q_acc], axis=1)     # (Cout, 3)


def _bn1_conv2_stats_kernel(a1_ref, skp_ref, scale_ref, shift_ref,
                            wy_ref, ws_ref, a2_ref, st_ref,
                            *, ksize, ypad_left, ypad_right):
    # a1_ref   : (BT, Cout, L1)      bf16  raw conv1 output
    # skp_ref  : (BT, Cout, Ls+2p)   bf16  skip features, pre-padded in the wrapper
    # scale/shift : (Cout, 1)        f32   folded BN1 affine
    # wy/ws    : (Cout, K*Cout)      bf16  conv2 weight halves (y part / skip part)
    # a2_ref   : (BT, Cout, L2)      bf16  raw conv2 output (pre-BN)
    # st_ref   : (1, Cout, 3)        f32   per-step stats (as in phase 1)
    bt = a1_ref.shape[0]
    cout, l2 = a2_ref.shape[1], a2_ref.shape[2]
    inv_l = 1.0 / float(l2)
    scale = scale_ref[...]
    shift = shift_ref[...]
    wy = wy_ref[...]
    ws = ws_ref[...]
    s_acc = jnp.zeros((cout, 1), jnp.float32)
    c_acc = jnp.zeros((cout, 1), jnp.float32)
    q_acc = jnp.zeros((cout, 1), jnp.float32)
    for b in range(bt):
        # BN1 + ReLU in f32 (v5e has no bf16 VPU path), then bf16 for the MXU.
        y = jnp.maximum(a1_ref[b].astype(jnp.float32) * scale + shift, 0.0)
        # center-pad (to skip length) + conv2 padding folded into one pad.
        yb = jnp.pad(y.astype(jnp.bfloat16), ((0, 0), (ypad_left, ypad_right)))
        sb = skp_ref[b]                          # already padded + bf16
        ycol = jnp.concatenate([yb[:, t:t + l2] for t in range(ksize)], axis=0)
        scol = jnp.concatenate([sb[:, t:t + l2] for t in range(ksize)], axis=0)
        a2 = (jnp.dot(wy, ycol, preferred_element_type=jnp.float32)
              + jnp.dot(ws, scol, preferred_element_type=jnp.float32))
        a2_ref[b] = a2.astype(a2_ref.dtype)
        rs = jnp.sum(a2, axis=1, keepdims=True)
        rm = rs * inv_l
        d = a2 - rm
        s_acc = s_acc + rs
        c_acc = c_acc + jnp.sum(d * d, axis=1, keepdims=True)
        q_acc = q_acc + rs * rm
    st_ref[0] = jnp.concatenate([s_acc, c_acc, q_acc], axis=1)


def _bn2_relu_kernel(a2_ref, scale_ref, shift_ref, o_ref):
    # a2_ref: (BT, Cout, L2) bf16 ; scale/shift: (Cout, 1) f32 ; o_ref: (BT, Cout, L2)
    z = a2_ref[...].astype(jnp.float32) * scale_ref[...] + shift_ref[...]
    o_ref[...] = jnp.maximum(z, 0.0).astype(o_ref.dtype)


# --------------------------------------------------------------------------
# Helpers
# --------------------------------------------------------------------------
def _tile_spec(bt, shape):
    """Block `bt` rows of the leading (batch) axis; trailing dims full (L on lanes)."""
    trail = len(shape) - 1
    return pl.BlockSpec((bt,) + tuple(shape[1:]),
                        lambda i, _t=trail: (i,) + (0,) * _t)


def _full_spec(shape):
    nd = len(shape)
    return pl.BlockSpec(tuple(shape), lambda i, _nd=nd: (0,) * _nd)


def _vmem_limit_bytes():
    """Generation-aware VMEM budget (v7x has 64 MiB/TC, v5e/v6e have 128 MiB)."""
    cap = 128 * 1024 * 1024
    try:
        info = pltpu.get_tpu_info()
        cap = int(getattr(info, "vmem_capacity_bytes", cap))
    except Exception:
        pass
    frac = 0.60 if cap <= 64 * 1024 * 1024 else 0.78
    return int(cap * frac)


def _pick_batch_tile(n, per_row_bytes, vmem_limit_bytes, max_tile=32):
    """Largest divisor of n that fits the VMEM budget and keeps >= 2 grid steps."""
    budget = max(vmem_limit_bytes // 3, 2 * 1024 * 1024)
    cap = int(max(1, min(max_tile, budget // max(per_row_bytes, 1))))
    for d in range(min(n, cap), 0, -1):
        if n % d == 0 and (n // d >= 2 or n == 1):
            return d
    return 1


def _fold_bn(stats, total_count, gamma, beta, eps):
    """Fold batch-stat BatchNorm into per-channel scale/shift.

    stats: (steps, Cout, 3) with columns [sum, centered sumsq, L*rowmean^2].
    """
    tot = jnp.sum(stats, axis=0)                 # (Cout, 3)
    s, c, q = tot[:, 0], tot[:, 1], tot[:, 2]
    mean = s / total_count
    var = jnp.maximum((c + q) / total_count - mean * mean, 0.0)   # biased variance
    g = gamma.astype(jnp.float32)
    b = beta.astype(jnp.float32)
    scale = g * jax.lax.rsqrt(var + eps)
    shift = b - mean * scale
    return scale.reshape(-1, 1), shift.reshape(-1, 1)


# --------------------------------------------------------------------------
# Wrapper
# --------------------------------------------------------------------------
def deconv_block(x, skip, params, *, kernel_size, padding,
                 upscale_factor=2, eps=1e-5):
    """x: (N, Cin, L), skip: (N, Cout, Ls) -> (N, Cout, Ls + 2p - k + 1). NCL layout."""
    n, cin, l = x.shape
    cout = params['w1'].shape[0]
    ls = skip.shape[2]
    k = kernel_size
    p = padding

    lp = upscale_factor * l + 2 * p              # upsampled + conv1-padded length
    l1 = lp - k + 1                              # conv1 output length
    diff = ls - l1
    if diff < 0:
        raise ValueError(
            f"skip length {ls} shorter than conv1 output {l1}; "
            "PyTorch reference would fail at torch.cat.")
    lsp = ls + 2 * p                             # conv2 input length (padded)
    l2 = lsp - k + 1                             # final output length
    ypl = diff // 2 + p                          # center-pad + conv2 pad, left
    ypr = (diff - diff // 2) + p                 # center-pad + conv2 pad, right
    out_dtype = x.dtype

    # ---- VMEM budget & batch tile ------------------------------------------------
    vmem_limit = _vmem_limit_bytes()
    itemsize_out = jnp.dtype(out_dtype).itemsize
    row_bytes = max(
        2 * (2 * cin * lp + 2 * cout * l1),                    # phase 1 (dbl-buffered)
        2 * (2 * cout * l1 + 2 * cout * lsp + 2 * cout * l2),  # phase 2
        2 * (2 * cout * l2 + itemsize_out * cout * l2),        # phase 3
    )
    bt = _pick_batch_tile(n, row_bytes, vmem_limit)
    steps = n // bt

    # ---- input prep (bf16-first cast; skip pre-padded once) ----------------------
    # TODO(synk): polyphase (even/odd column) weight split would let phase 1 read x
    # directly and skip this HBM round trip; the in-kernel (L,2)->(2L) lane
    # interleave has no guaranteed Mosaic lowering, so nearest-upsample stays here.
    x_up = jnp.repeat(x.astype(jnp.bfloat16), upscale_factor, axis=-1)
    x_up = jnp.pad(x_up, ((0, 0), (0, 0), (p, p)))
    skip_pad = jnp.pad(skip.astype(jnp.bfloat16), ((0, 0), (0, 0), (p, p)))

    # Tap-fused bf16 weights (tiny; wrapper-side reshape is negligible).
    # Conv biases b1/b2 are cancelled exactly by batch-stat BN and never read.
    w1 = jnp.transpose(params['w1'], (0, 2, 1)).reshape(cout, k * cin)
    w1 = w1.astype(jnp.bfloat16)
    w2 = params['w2']
    w2y = jnp.transpose(w2[:, :cout, :], (0, 2, 1)).reshape(cout, k * cout)
    w2y = w2y.astype(jnp.bfloat16)
    w2s = jnp.transpose(w2[:, cout:, :], (0, 2, 1)).reshape(cout, k * cout)
    w2s = w2s.astype(jnp.bfloat16)

    cparams = pltpu.CompilerParams(
        dimension_semantics=("parallel",),
        vmem_limit_bytes=int(vmem_limit))

    st_spec = pl.BlockSpec((1, cout, 3), lambda i: (i, 0, 0))

    # ---- phase 1: conv1 (raw, bf16 out) + per-channel partial stats --------------
    a1, st1 = pl.pallas_call(
        functools.partial(_conv1_stats_kernel, ksize=k),
        out_shape=(jax.ShapeDtypeStruct((n, cout, l1), jnp.bfloat16),
                   jax.ShapeDtypeStruct((steps, cout, 3), jnp.float32)),
        grid=(steps,),
        in_specs=[_tile_spec(bt, x_up.shape), _full_spec(w1.shape)],
        out_specs=(_tile_spec(bt, (n, cout, l1)), st_spec),
        compiler_params=cparams,
    )(x_up, w1)

    scale1, shift1 = _fold_bn(st1, float(n * l1), params['g1'], params['be1'], eps)

    # ---- phase 2: BN1 + ReLU + pad + conv2 (split weights, bf16 out) + stats -----
    a2, st2 = pl.pallas_call(
        functools.partial(_bn1_conv2_stats_kernel, ksize=k,
                          ypad_left=ypl, ypad_right=ypr),
        out_shape=(jax.ShapeDtypeStruct((n, cout, l2), jnp.bfloat16),
                   jax.ShapeDtypeStruct((steps, cout, 3), jnp.float32)),
        grid=(steps,),
        in_specs=[_tile_spec(bt, a1.shape), _tile_spec(bt, skip_pad.shape),
                  _full_spec(scale1.shape), _full_spec(shift1.shape),
                  _full_spec(w2y.shape), _full_spec(w2s.shape)],
        out_specs=(_tile_spec(bt, (n, cout, l2)), st_spec),
        compiler_params=cparams,
    )(a1, skip_pad, scale1, shift1, w2y, w2s)

    scale2, shift2 = _fold_bn(st2, float(n * l2), params['g2'], params['be2'], eps)

    # ---- phase 3: BN2 + ReLU -> final NCL output ---------------------------------
    phase3_kwargs = {}
    if jnp.dtype(out_dtype) == jnp.dtype(jnp.bfloat16):
        phase3_kwargs["input_output_aliases"] = {0: 0}   # reuse a2's HBM buffer
    out = pl.pallas_call(
        _bn2_relu_kernel,
        out_shape=jax.ShapeDtypeStruct((n, cout, l2), out_dtype),
        grid=(steps,),
        in_specs=[_tile_spec(bt, a2.shape),
                  _full_spec(scale2.shape), _full_spec(shift2.shape)],
        out_specs=_tile_spec(bt, (n, cout, l2)),
        compiler_params=cparams,
        **phase3_kwargs,
    )(a2, scale2, shift2)

    # TODO(synk): for very long sequences, additionally tile the length axis with a
    # halo inside each phase, and consider pl.Buffered(3) on the activation specs
    # on v5e/v6e where VMEM headroom allows it.
    # TODO(synk): eval-mode (running-stat) BatchNorm variant not implemented; this
    # matches a freshly constructed PyTorch module (training-mode batch statistics).
    return out


# --------------------------------------------------------------------------
# Params + pure-JAX reference (for validation only)
# --------------------------------------------------------------------------
def init_params(key, in_channels, out_channels, kernel_size):
    ks = jax.random.split(key, 4)
    s1 = 1.0 / jnp.sqrt(in_channels * kernel_size)
    s2 = 1.0 / jnp.sqrt(2 * out_channels * kernel_size)
    return {
        'w1': jax.random.uniform(ks[0], (out_channels, in_channels, kernel_size),
                                 jnp.float32, -s1, s1),
        'b1': jax.random.uniform(ks[1], (out_channels,), jnp.float32, -s1, s1),
        'g1': jnp.ones((out_channels,), jnp.float32),
        'be1': jnp.zeros((out_channels,), jnp.float32),
        'w2': jax.random.uniform(ks[2], (out_channels, 2 * out_channels, kernel_size),
                                 jnp.float32, -s2, s2),
        'b2': jax.random.uniform(ks[3], (out_channels,), jnp.float32, -s2, s2),
        'g2': jnp.ones((out_channels,), jnp.float32),
        'be2': jnp.zeros((out_channels,), jnp.float32),
    }


def _conv1d_ref(x, w, b, padding):
    xp = jnp.pad(x, ((0, 0), (0, 0), (padding, padding)))
    k = w.shape[-1]
    lo = xp.shape[-1] - k + 1
    out = jnp.zeros((x.shape[0], w.shape[0], lo), jnp.float32)
    for t in range(k):
        out = out + jnp.einsum('oc,ncl->nol', w[:, :, t], xp[:, :, t:t + lo],
                               precision=jax.lax.Precision.HIGHEST)
    return out + b[None, :, None]


def _bn_relu_ref(x, gamma, beta, eps):
    mean = jnp.mean(x, axis=(0, 2), keepdims=True)
    var = jnp.mean((x - mean) ** 2, axis=(0, 2), keepdims=True)
    y = (x - mean) * jax.lax.rsqrt(var + eps)
    y = y * gamma[None, :, None] + beta[None, :, None]
    return jnp.maximum(y, 0.0)


def _reference(x, skip, params, kernel_size, padding, upscale_factor, eps):
    xu = jnp.repeat(x, upscale_factor, axis=-1)
    y = _conv1d_ref(xu, params['w1'], params['b1'], padding)
    y = _bn_relu_ref(y, params['g1'], params['be1'], eps)
    diff = skip.shape[2] - y.shape[2]
    if diff > 0:
        y = jnp.pad(y, ((0, 0), (0, 0), (diff // 2, diff - diff // 2)))
    z = jnp.concatenate([y, skip], axis=1)
    z = _conv1d_ref(z, params['w2'], params['b2'], padding)
    return _bn_relu_ref(z, params['g2'], params['be2'], eps)


if __name__ == "__main__":
    # Small deterministic example: N=2, Cin=4, Cout=8, L=16, k=3, p=1, upscale=2
    N, C_IN, C_OUT, L = 2, 4, 8, 16
    K, P, UP = 3, 1, 2
    LS = L * UP  # skip length equals the upsampled length -> center-pad diff == 0

    key = jax.random.PRNGKey(0)
    kx, kskip, kparam = jax.random.split(key, 3)
    x = jax.random.normal(kx, (N, C_IN, L), jnp.float32)
    skip = jax.random.normal(kskip, (N, C_OUT, LS), jnp.float32)
    params = init_params(kparam, C_IN, C_OUT, K)

    fwd = jax.jit(functools.partial(deconv_block, kernel_size=K, padding=P,
                                    upscale_factor=UP))
    out = jax.block_until_ready(fwd(x, skip, params))

    assert out.shape == (N, C_OUT, LS + 2 * P - K + 1), out.shape
    assert bool(jnp.all(jnp.isfinite(out)))
    assert bool(jnp.all(out >= 0.0))  # final ReLU

    ref = jax.block_until_ready(
        _reference(x, skip, params, K, P, UP, 1e-5))
    max_err = float(jnp.max(jnp.abs(out - ref)))
    mean_err = float(jnp.mean(jnp.abs(out - ref)))
    assert max_err < 0.35 and mean_err < 0.035, (max_err, mean_err)
    print("KERNEL_OK")
</pallas_src>

<mosaic_0001>
module attributes {stable_mosaic.version = 11 : i64} {
  func.func @_conv1_stats_kernel(%arg0: i32, %arg1: memref<1x4x34xbf16, #tpu.memory_space<vmem>>, %arg2: memref<8x12xbf16, #tpu.memory_space<vmem>>, %arg3: memref<1x8x32xbf16, #tpu.memory_space<vmem>>, %arg4: memref<1x8x3xf32, #tpu.memory_space<vmem>>) attributes {dimension_semantics = [#tpu.dimension_semantics<parallel>], iteration_bounds = array<i64: 2>, scalar_prefetch = 0 : i64, scratch_operands = 0 : i64, tpu.core_type = #tpu.core_type<tc>, window_params = [{transform_indices = @transform_0, window_bounds = array<i64: 1, 4, 34>}, {pipeline_mode = #tpu.pipeline_mode<synchronous>, transform_indices = @transform_1, window_bounds = array<i64: 8, 12>}, {transform_indices = @transform_2, window_bounds = array<i64: 1, 8, 32>}, {transform_indices = @transform_3, window_bounds = array<i64: 1, 8, 3>}]} {
    %c0 = arith.constant 0 : index
    %c0_0 = arith.constant 0 : index
    %0 = vector.load %arg2[%c0, %c0_0] : memref<8x12xbf16, #tpu.memory_space<vmem>>, vector<8x12xbf16>
    %cst = arith.constant 0.000000e+00 : f32
    %1 = vector.broadcast %cst : f32 to vector<8x1xf32>
    %cst_1 = arith.constant 0.000000e+00 : f32
    %2 = vector.broadcast %cst_1 : f32 to vector<8x1xf32>
    %cst_2 = arith.constant 0.000000e+00 : f32
    %3 = vector.broadcast %cst_2 : f32 to vector<8x1xf32>
    %c0_3 = arith.constant 0 : index
    %c0_4 = arith.constant 0 : index
    %c0_5 = arith.constant 0 : index
    %4 = vector.load %arg1[%c0_3, %c0_4, %c0_5] : memref<1x4x34xbf16, #tpu.memory_space<vmem>>, vector<1x4x34xbf16>
    %5 = vector.shape_cast %4 : vector<1x4x34xbf16> to vector<4x34xbf16>
    %6 = vector.extract_strided_slice %5 {offsets = [0, 0], sizes = [4, 32], strides = [1, 1]} : vector<4x34xbf16> to vector<4x32xbf16>
    %7 = vector.extract_strided_slice %5 {offsets = [0, 1], sizes = [4, 32], strides = [1, 1]} : vector<4x34xbf16> to vector<4x32xbf16>
    %8 = vector.extract_strided_slice %5 {offsets = [0, 2], sizes = [4, 32], strides = [1, 1]} : vector<4x34xbf16> to vector<4x32xbf16>
    %9 = tpu.concatenate %6, %7, %8 in 0 : vector<4x32xbf16>, vector<4x32xbf16>, vector<4x32xbf16> -> vector<12x32xbf16>
    %cst_6 = arith.constant dense<0.000000e+00> : vector<8x32xf32>
    %10 = tpu.matmul %0, %9, %cst_6 {dimension_numbers = #tpu.dot_dimension_numbers<[1], [0], [0], [1], [0, 0, 1, 1], [], []>} : vector<8x12xbf16>, vector<12x32xbf16>, vector<8x32xf32> -> vector<8x32xf32>
    %11 = arith.truncf %10 : vector<8x32xf32> to vector<8x32xbf16>
    %c0_7 = arith.constant 0 : index
    %c0_8 = arith.constant 0 : index
    %c0_9 = arith.constant 0 : index
    %12 = vector.load %arg3[%c0_7, %c0_8, %c0_9] : memref<1x8x32xbf16, #tpu.memory_space<vmem>>, vector<1x8x32xbf16>
    %13 = vector.shape_cast %12 : vector<1x8x32xbf16> to vector<8x32xbf16>
    %14 = vector.shape_cast %11 : vector<8x32xbf16> to vector<1x8x32xbf16>
    tpu.vector_store %arg3[%c0_7, %c0_8, %c0_9], %14 {strides = array<i32>} : memref<1x8x32xbf16, #tpu.memory_space<vmem>>, vector<1x8x32xbf16>,
    %cst_10 = arith.constant dense<0.000000e+00> : vector<8xf32>
    %15 = vector.multi_reduction <add>, %10, %cst_10 [1] : vector<8x32xf32> to vector<8xf32>
    %16 = vector.shape_cast %15 : vector<8xf32> to vector<8x1xf32>
    %cst_11 = arith.constant 3.125000e-02 : f32
    %17 = vector.broadcast %cst_11 : f32 to vector<8x1xf32>
    %18 = arith.mulf %16, %17 : vector<8x1xf32>
    %19 = vector.broadcast %18 : vector<8x1xf32> to vector<8x32xf32>
    %20 = arith.subf %10, %19 : vector<8x32xf32>
    %21 = arith.addf %1, %16 : vector<8x1xf32>
    %22 = arith.mulf %20, %20 : vector<8x32xf32>
    %cst_12 = arith.constant dense<0.000000e+00> : vector<8xf32>
    %23 = vector.multi_reduction <add>, %22, %cst_12 [1] : vector<8x32xf32> to vector<8xf32>
    %24 = vector.shape_cast %23 : vector<8xf32> to vector<8x1xf32>
    %25 = arith.addf %2, %24 : vector<8x1xf32>
    %26 = arith.mulf %16, %18 : vector<8x1xf32>
    %27 = arith.addf %3, %26 : vector<8x1xf32>
    %28 = tpu.concatenate %21, %25, %27 in 1 : vector<8x1xf32>, vector<8x1xf32>, vector<8x1xf32> -> vector<8x3xf32>
    %c0_13 = arith.constant 0 : index
    %c0_14 = arith.constant 0 : index
    %c0_15 = arith.constant 0 : index
    %29 = vector.load %arg4[%c0_13, %c0_14, %c0_15] : memref<1x8x3xf32, #tpu.memory_space<vmem>>, vector<1x8x3xf32>
    %30 = vector.shape_cast %29 : vector<1x8x3xf32> to vector<8x3xf32>
    %31 = vector.shape_cast %28 : vector<8x3xf32> to vector<1x8x3xf32>
    tpu.vector_store %arg4[%c0_13, %c0_14, %c0_15], %31 {strides = array<i32>} : memref<1x8x3xf32, #tpu.memory_space<vmem>>, vector<1x8x3xf32>,
    return
  }
  func.func @transform_0(%arg0: i32) -> (i32, i32, i32) {
    %c0_i32 = arith.constant 0 : i32
    %c0_i32_0 = arith.constant 0 : i32
    %c0_i32_1 = arith.constant 0 : i32
    return %arg0, %c0_i32, %c0_i32_0 : i32, i32, i32
  }
  func.func @transform_1(%arg0: i32) -> (i32, i32) {
    %c0_i32 = arith.constant 0 : i32
    %c0_i32_0 = arith.constant 0 : i32
    %c0_i32_1 = arith.constant 0 : i32
    return %c0_i32, %c0_i32_0 : i32, i32
  }
  func.func @transform_2(%arg0: i32) -> (i32, i32, i32) {
    %c0_i32 = arith.constant 0 : i32
    %c0_i32_0 = arith.constant 0 : i32
    %c0_i32_1 = arith.constant 0 : i32
    return %arg0, %c0_i32, %c0_i32_0 : i32, i32, i32
  }
  func.func @transform_3(%arg0: i32) -> (i32, i32, i32) {
    %c0_i32 = arith.constant 0 : i32
    %c0_i32_0 = arith.constant 0 : i32
    %c0_i32_1 = arith.constant 0 : i32
    return %arg0, %c0_i32, %c0_i32_0 : i32, i32, i32
  }
}

module attributes {stable_mosaic.version = 11 : i64} {
  func.func @_bn2_relu_kernel(%arg0: i32, %arg1: memref<1x8x32xbf16, #tpu.memory_space<vmem>>, %arg2: memref<8x1xf32, #tpu.memory_space<vmem>>, %arg3: memref<8x1xf32, #tpu.memory_space<vmem>>, %arg4: memref<1x8x32xf32, #tpu.memory_space<vmem>>) attributes {dimension_semantics = [#tpu.dimension_semantics<parallel>], iteration_bounds = array<i64: 2>, scalar_prefetch = 0 : i64, scratch_operands = 0 : i64, tpu.core_type = #tpu.core_type<tc>, window_params = [{transform_indices = @transform_0, window_bounds = array<i64: 1, 8, 32>}, {pipeline_mode = #tpu.pipeline_mode<synchronous>, transform_indices = @transform_1, window_bounds = array<i64: 8, 1>}, {pipeline_mode = #tpu.pipeline_mode<synchronous>, transform_indices = @transform_2, window_bounds = array<i64: 8, 1>}, {transform_indices = @transform_3, window_bounds = array<i64: 1, 8, 32>}]} {
    %c0 = arith.constant 0 : index
    %c0_0 = arith.constant 0 : index
    %c0_1 = arith.constant 0 : index
    %0 = vector.load %arg1[%c0, %c0_0, %c0_1] : memref<1x8x32xbf16, #tpu.memory_space<vmem>>, vector<1x8x32xbf16>
    %1 = arith.extf %0 : vector<1x8x32xbf16> to vector<1x8x32xf32>
    %c0_2 = arith.constant 0 : index
    %c0_3 = arith.constant 0 : index
    %2 = vector.load %arg2[%c0_2, %c0_3] : memref<8x1xf32, #tpu.memory_space<vmem>>, vector<8x1xf32>
    %3 = vector.shape_cast %2 : vector<8x1xf32> to vector<1x8x1xf32>
    %4 = vector.broadcast %3 : vector<1x8x1xf32> to vector<1x8x32xf32>
    %5 = arith.mulf %1, %4 : vector<1x8x32xf32>
    %c0_4 = arith.constant 0 : index
    %c0_5 = arith.constant 0 : index
    %6 = vector.load %arg3[%c0_4, %c0_5] : memref<8x1xf32, #tpu.memory_space<vmem>>, vector<8x1xf32>
    %7 = vector.shape_cast %6 : vector<8x1xf32> to vector<1x8x1xf32>
    %8 = vector.broadcast %7 : vector<1x8x1xf32> to vector<1x8x32xf32>
    %9 = arith.addf %5, %8 : vector<1x8x32xf32>
    %cst = arith.constant 0.000000e+00 : f32
    %10 = vector.broadcast %cst : f32 to vector<1x8x32xf32>
    %11 = arith.maximumf %9, %10 : vector<1x8x32xf32>
    %c0_6 = arith.constant 0 : index
    %c0_7 = arith.constant 0 : index
    %c0_8 = arith.constant 0 : index
    %12 = vector.load %arg4[%c0_6, %c0_7, %c0_8] : memref<1x8x32xf32, #tpu.memory_space<vmem>>, vector<1x8x32xf32>
    tpu.vector_store %arg4[%c0_6, %c0_7, %c0_8], %11 {strides = array<i32>} : memref<1x8x32xf32, #tpu.memory_space<vmem>>, vector<1x8x32xf32>,
    return
  }
  func.func @transform_0(%arg0: i32) -> (i32, i32, i32) {
    %c0_i32 = arith.constant 0 : i32
    %c0_i32_0 = arith.constant 0 : i32
    %c0_i32_1 = arith.constant 0 : i32
    return %arg0, %c0_i32, %c0_i32_0 : i32, i32, i32
  }
  func.func @transform_1(%arg0: i32) -> (i32, i32) {
    %c0_i32 = arith.constant 0 : i32
    %c0_i32_0 = arith.constant 0 : i32
    %c0_i32_1 = arith.constant 0 : i32
    return %c0_i32, %c0_i32_0 : i32, i32
  }
  func.func @transform_2(%arg0: i32) -> (i32, i32) {
    %c0_i32 = arith.constant 0 : i32
    %c0_i32_0 = arith.constant 0 : i32
    %c0_i32_1 = arith.constant 0 : i32
    return %c0_i32, %c0_i32_0 : i32, i32
  }
  func.func @transform_3(%arg0: i32) -> (i32, i32, i32) {
    %c0_i32 = arith.constant 0 : i32
    %c0_i32_0 = arith.constant 0 : i32
    %c0_i32_1 = arith.constant 0 : i32
    return %arg0, %c0_i32, %c0_i32_0 : i32, i32, i32
  }
}

module attributes {stable_mosaic.version = 11 : i64} {
  func.func @_bn1_conv2_stats_kernel(%arg0: i32, %arg1: memref<1x8x32xbf16, #tpu.memory_space<vmem>>, %arg2: memref<1x8x34xbf16, #tpu.memory_space<vmem>>, %arg3: memref<8x1xf32, #tpu.memory_space<vmem>>, %arg4: memref<8x1xf32, #tpu.memory_space<vmem>>, %arg5: memref<8x24xbf16, #tpu.memory_space<vmem>>, %arg6: memref<8x24xbf16, #tpu.memory_space<vmem>>, %arg7: memref<1x8x32xbf16, #tpu.memory_space<vmem>>, %arg8: memref<1x8x3xf32, #tpu.memory_space<vmem>>) attributes {dimension_semantics = [#tpu.dimension_semantics<parallel>], iteration_bounds = array<i64: 2>, scalar_prefetch = 0 : i64, scratch_operands = 0 : i64, tpu.core_type = #tpu.core_type<tc>, window_params = [{transform_indices = @transform_0, window_bounds = array<i64: 1, 8, 32>}, {transform_indices = @transform_1, window_bounds = array<i64: 1, 8, 34>}, {pipeline_mode = #tpu.pipeline_mode<synchronous>, transform_indices = @transform_2, window_bounds = array<i64: 8, 1>}, {pipeline_mode = #tpu.pipeline_mode<synchronous>, transform_indices = @transform_3, window_bounds = array<i64: 8, 1>}, {pipeline_mode = #tpu.pipeline_mode<synchronous>, transform_indices = @transform_4, window_bounds = array<i64: 8, 24>}, {pipeline_mode = #tpu.pipeline_mode<synchronous>, transform_indices = @transform_5, window_bounds = array<i64: 8, 24>}, {transform_indices = @transform_6, window_bounds = array<i64: 1, 8, 32>}, {transform_indices = @transform_7, window_bounds = array<i64: 1, 8, 3>}]} {
    %c0 = arith.constant 0 : index
    %c0_0 = arith.constant 0 : index
    %0 = vector.load %arg3[%c0, %c0_0] : memref<8x1xf32, #tpu.memory_space<vmem>>, vector<8x1xf32>
    %c0_1 = arith.constant 0 : index
    %c0_2 = arith.constant 0 : index
    %1 = vector.load %arg4[%c0_1, %c0_2] : memref<8x1xf32, #tpu.memory_space<vmem>>, vector<8x1xf32>
    %c0_3 = arith.constant 0 : index
    %c0_4 = arith.constant 0 : index
    %2 = vector.load %arg5[%c0_3, %c0_4] : memref<8x24xbf16, #tpu.memory_space<vmem>>, vector<8x24xbf16>
    %c0_5 = arith.constant 0 : index
    %c0_6 = arith.constant 0 : index
    %3 = vector.load %arg6[%c0_5, %c0_6] : memref<8x24xbf16, #tpu.memory_space<vmem>>, vector<8x24xbf16>
    %cst = arith.constant 0.000000e+00 : f32
    %4 = vector.broadcast %cst : f32 to vector<8x1xf32>
    %cst_7 = arith.constant 0.000000e+00 : f32
    %5 = vector.broadcast %cst_7 : f32 to vector<8x1xf32>
    %cst_8 = arith.constant 0.000000e+00 : f32
    %6 = vector.broadcast %cst_8 : f32 to vector<8x1xf32>
    %c0_9 = arith.constant 0 : index
    %c0_10 = arith.constant 0 : index
    %c0_11 = arith.constant 0 : index
    %7 = vector.load %arg1[%c0_9, %c0_10, %c0_11] : memref<1x8x32xbf16, #tpu.memory_space<vmem>>, vector<1x8x32xbf16>
    %8 = vector.shape_cast %7 : vector<1x8x32xbf16> to vector<8x32xbf16>
    %9 = arith.extf %8 : vector<8x32xbf16> to vector<8x32xf32>
    %10 = vector.broadcast %0 : vector<8x1xf32> to vector<8x32xf32>
    %11 = arith.mulf %9, %10 : vector<8x32xf32>
    %12 = vector.broadcast %1 : vector<8x1xf32> to vector<8x32xf32>
    %13 = arith.addf %11, %12 : vector<8x32xf32>
    %cst_12 = arith.constant 0.000000e+00 : f32
    %14 = vector.broadcast %cst_12 : f32 to vector<8x32xf32>
    %15 = arith.maximumf %13, %14 : vector<8x32xf32>
    %16 = arith.truncf %15 : vector<8x32xf32> to vector<8x32xbf16>
    %c0_i32 = arith.constant 0 : i32
    %17 = arith.sitofp %c0_i32 : i32 to bf16
    %18 = vector.broadcast %17 : bf16 to vector<8x1xbf16>
    %19 = tpu.concatenate %18, %16 in 1 : vector<8x1xbf16>, vector<8x32xbf16> -> vector<8x33xbf16>
    %20 = vector.broadcast %17 : bf16 to vector<8x1xbf16>
    %21 = tpu.concatenate %19, %20 in 1 : vector<8x33xbf16>, vector<8x1xbf16> -> vector<8x34xbf16>
    %c0_13 = arith.constant 0 : index
    %c0_14 = arith.constant 0 : index
    %c0_15 = arith.constant 0 : index
    %22 = vector.load %arg2[%c0_13, %c0_14, %c0_15] : memref<1x8x34xbf16, #tpu.memory_space<vmem>>, vector<1x8x34xbf16>
    %23 = vector.shape_cast %22 : vector<1x8x34xbf16> to vector<8x34xbf16>
    %24 = vector.extract_strided_slice %21 {offsets = [0, 0], sizes = [8, 32], strides = [1, 1]} : vector<8x34xbf16> to vector<8x32xbf16>
    %25 = vector.extract_strided_slice %21 {offsets = [0, 1], sizes = [8, 32], strides = [1, 1]} : vector<8x34xbf16> to vector<8x32xbf16>
    %26 = vector.extract_strided_slice %21 {offsets = [0, 2], sizes = [8, 32], strides = [1, 1]} : vector<8x34xbf16> to vector<8x32xbf16>
    %27 = tpu.concatenate %24, %25, %26 in 0 : vector<8x32xbf16>, vector<8x32xbf16>, vector<8x32xbf16> -> vector<24x32xbf16>
    %28 = vector.extract_strided_slice %23 {offsets = [0, 0], sizes = [8, 32], strides = [1, 1]} : vector<8x34xbf16> to vector<8x32xbf16>
    %29 = vector.extract_strided_slice %23 {offsets = [0, 1], sizes = [8, 32], strides = [1, 1]} : vector<8x34xbf16> to vector<8x32xbf16>
    %30 = vector.extract_strided_slice %23 {offsets = [0, 2], sizes = [8, 32], strides = [1, 1]} : vector<8x34xbf16> to vector<8x32xbf16>
    %31 = tpu.concatenate %28, %29, %30 in 0 : vector<8x32xbf16>, vector<8x32xbf16>, vector<8x32xbf16> -> vector<24x32xbf16>
    %cst_16 = arith.constant dense<0.000000e+00> : vector<8x32xf32>
    %32 = tpu.matmul %2, %27, %cst_16 {dimension_numbers = #tpu.dot_dimension_numbers<[1], [0], [0], [1], [0, 0, 1, 1], [], []>} : vector<8x24xbf16>, vector<24x32xbf16>, vector<8x32xf32> -> vector<8x32xf32>
    %cst_17 = arith.constant dense<0.000000e+00> : vector<8x32xf32>
    %33 = tpu.matmul %3, %31, %cst_17 {dimension_numbers = #tpu.dot_dimension_numbers<[1], [0], [0], [1], [0, 0, 1, 1], [], []>} : vector<8x24xbf16>, vector<24x32xbf16>, vector<8x32xf32> -> vector<8x32xf32>
    %34 = arith.addf %32, %33 : vector<8x32xf32>
    %35 = arith.truncf %34 : vector<8x32xf32> to vector<8x32xbf16>
    %c0_18 = arith.constant 0 : index
    %c0_19 = arith.constant 0 : index
    %c0_20 = arith.constant 0 : index
    %36 = vector.load %arg7[%c0_18, %c0_19, %c0_20] : memref<1x8x32xbf16, #tpu.memory_space<vmem>>, vector<1x8x32xbf16>
    %37 = vector.shape_cast %36 : vector<1x8x32xbf16> to vector<8x32xbf16>
    %38 = vector.shape_cast %35 : vector<8x32xbf16> to vector<1x8x32xbf16>
    tpu.vector_store %arg7[%c0_18, %c0_19, %c0_20], %38 {strides = array<i32>} : memref<1x8x32xbf16, #tpu.memory_space<vmem>>, vector<1x8x32xbf16>,
    %cst_21 = arith.constant dense<0.000000e+00> : vector<8xf32>
    %39 = vector.multi_reduction <add>, %34, %cst_21 [1] : vector<8x32xf32> to vector<8xf32>
    %40 = vector.shape_cast %39 : vector<8xf32> to vector<8x1xf32>
    %cst_22 = arith.constant 3.125000e-02 : f32
    %41 = vector.broadcast %cst_22 : f32 to vector<8x1xf32>
    %42 = arith.mulf %40, %41 : vector<8x1xf32>
    %43 = vector.broadcast %42 : vector<8x1xf32> to vector<8x32xf32>
    %44 = arith.subf %34, %43 : vector<8x32xf32>
    %45 = arith.addf %4, %40 : vector<8x1xf32>
    %46 = arith.mulf %44, %44 : vector<8x32xf32>
    %cst_23 = arith.constant dense<0.000000e+00> : vector<8xf32>
    %47 = vector.multi_reduction <add>, %46, %cst_23 [1] : vector<8x32xf32> to vector<8xf32>
    %48 = vector.shape_cast %47 : vector<8xf32> to vector<8x1xf32>
    %49 = arith.addf %5, %48 : vector<8x1xf32>
    %50 = arith.mulf %40, %42 : vector<8x1xf32>
    %51 = arith.addf %6, %50 : vector<8x1xf32>
    %52 = tpu.concatenate %45, %49, %51 in 1 : vector<8x1xf32>, vector<8x1xf32>, vector<8x1xf32> -> vector<8x3xf32>
    %c0_24 = arith.constant 0 : index
    %c0_25 = arith.constant 0 : index
    %c0_26 = arith.constant 0 : index
    %53 = vector.load %arg8[%c0_24, %c0_25, %c0_26] : memref<1x8x3xf32, #tpu.memory_space<vmem>>, vector<1x8x3xf32>
    %54 = vector.shape_cast %53 : vector<1x8x3xf32> to vector<8x3xf32>
    %55 = vector.shape_cast %52 : vector<8x3xf32> to vector<1x8x3xf32>
    tpu.vector_store %arg8[%c0_24, %c0_25, %c0_26], %55 {strides = array<i32>} : memref<1x8x3xf32, #tpu.memory_space<vmem>>, vector<1x8x3xf32>,
    return
  }
  func.func @transform_0(%arg0: i32) -> (i32, i32, i32) {
    %c0_i32 = arith.constant 0 : i32
    %c0_i32_0 = arith.constant 0 : i32
    %c0_i32_1 = arith.constant 0 : i32
    return %arg0, %c0_i32, %c0_i32_0 : i32, i32, i32
  }
  func.func @transform_1(%arg0: i32) -> (i32, i32, i32) {
    %c0_i32 = arith.constant 0 : i32
    %c0_i32_0 = arith.constant 0 : i32
    %c0_i32_1 = arith.constant 0 : i32
    return %arg0, %c0_i32, %c0_i32_0 : i32, i32, i32
  }
  func.func @transform_2(%arg0: i32) -> (i32, i32) {
    %c0_i32 = arith.constant 0 : i32
    %c0_i32_0 = arith.constant 0 : i32
    %c0_i32_1 = arith.constant 0 : i32
    return %c0_i32, %c0_i32_0 : i32, i32
  }
  func.func @transform_3(%arg0: i32) -> (i32, i32) {
    %c0_i32 = arith.constant 0 : i32
    %c0_i32_0 = arith.constant 0 : i32
    %c0_i32_1 = arith.constant 0 : i32
    return %c0_i32, %c0_i32_0 : i32, i32
  }
  func.func @transform_4(%arg0: i32) -> (i32, i32) {
    %c0_i32 = arith.constant 0 : i32
    %c0_i32_0 = arith.constant 0 : i32
    %c0_i32_1 = arith.constant 0 : i32
    return %c0_i32, %c0_i32_0 : i32, i32
  }
  func.func @transform_5(%arg0: i32) -> (i32, i32) {
    %c0_i32 = arith.constant 0 : i32
    %c0_i32_0 = arith.constant 0 : i32
    %c0_i32_1 = arith.constant 0 : i32
    return %c0_i32, %c0_i32_0 : i32, i32
  }
  func.func @transform_6(%arg0: i32) -> (i32, i32, i32) {
    %c0_i32 = arith.constant 0 : i32
    %c0_i32_0 = arith.constant 0 : i32
    %c0_i32_1 = arith.constant 0 : i32
    return %arg0, %c0_i32, %c0_i32_0 : i32, i32, i32
  }
  func.func @transform_7(%arg0: i32) -> (i32, i32, i32) {
    %c0_i32 = arith.constant 0 : i32
    %c0_i32_0 = arith.constant 0 : i32
    %c0_i32_1 = arith.constant 0 : i32
    return %arg0, %c0_i32, %c0_i32_0 : i32, i32, i32
  }
}

</mosaic_0001>

<bundles_post_ra>
// kernel: deconv_block.5
= control target key start
LH: loop header
LB: loop body
LE: loop exit
PB: predicated region body
PF: predicated region fallthrough
CT: control target
= control target key end

     0   :  { %8 = vsyncpa [#allocation3], 0  ;;  %s486_s0 = inlined_call_operand.vmem [shape: bf16[2,8,32], index: 0, kind: input, shape index: {}]   ;;  %s487_s1 = inlined_call_operand.vmem [shape: f32[8,1], index: 1, kind: input, shape index: {}]   ;;  %s488_s2 = inlined_call_operand.vmem [shape: f32[8,1], index: 2, kind: input, shape index: {}]   ;;  %s489_s3 = inlined_call_operand.hbm [shape: f32[2,8,32], index: 3, kind: output, shape index: {}]  }
   0x1   :  { %10 = vsyncpa [#allocation3 + $0x1], 0  ;;  %s393_s12 = smov 0   ;;  %s395_s13 = smov 0  }
   0x2   :  { %s397_s14 = smov 0   ;;  %s399_s15 = smov 0  }
   0x3 LB: > { %s414_s16 = sadd.s32 4294967295, %s369_s15   ;;  %s258_s17 = sadd.s32 4294967294, %s369_s15   ;;  %s369_s15 = sphi %s399_s15, %s495_s15   ;;  %s365_s14 = sphi %s397_s14, %s494_s14   ;;  %s361_s13 = sphi %s395_s13, %s493_s13   ;;  %s357_s12 = sphi %s393_s12, %s492_s12  }
   0x4   : > { %s418_s18 = sadd.s32 1, %s369_s15   ;;  %s91_s19 = sadd.s32 1, %s365_s14 }
   0x5   : > { %s88_s20 = ssub.s32 %s369_s15, %s418_s18  ;;  %p101_p0 = scmp.ne.s32.totalorder %s365_s14, %s361_s13 }
   0x6   : > { %p89_p1 = scmp.eq.s32.totalorder %s88_s20, 0  ;;  %p102_p2 = scmp.eq.s32.totalorder %s414_s16, 1 }
   0x7   : > { %p107_p3 = scmp.ne.s32.totalorder %s361_s13, %s357_s12  ;;  %p108_p4 = scmp.eq.s32.totalorder %s258_s17, 1 }
   0x8   : > { %s429_s21 = scalar_select %p89_p1, %s365_s14, %s91_s19  }
   0x9   : > { %p431_p5 = por %p102_p2, %p101_p0  ;;  %p435_p6 = por %p108_p4, %p107_p3 }
   0xa   : > { %p261_p7 = scmp.ge.s32.totalorder %s369_s15, 1  ;;  %p139_p8 = scmp.lt.s32.totalorder %s369_s15, 3 }
   0xc   : > { %p140_p9 = pnand %p261_p7, %p139_p8 }
   0xd   : > { %p162_p10 = scmp.lt.s32.totalorder (!%p140_p9), %s414_s16, 1  ;;  %s159_s6 = sand.u32 (!%p140_p9), 1, %s361_s13  }
   0xe   : > { %143 = sbr.rel (%p140_p9) target bundleno = 166 (0xa6), region = 32  ;;  %s262_s7 = sshll.u32 (!%p140_p9), %s159_s6, 3 }
   0xf   : > { %s265_s8 = sshll.u32 (!%p140_p9), %s414_s16, 7  ;;  %s161_s9 = scalar_lea.vmem (!%p140_p9), [#allocation2], %s262_s7 }
  0x10   : > { %s199_s10 = sshll.u32 (!%p140_p9), %s161_s9, 4  ;;  %s197_s19 = scalar_lea.hbm (!%p140_p9), %s489_s3, %s265_s8  ;;  %s200_s10 = int_to_ptr.vmem [resolvable:$true] %s199_s10 }
  0x11   : > { %s186_s20 = scalar_lea.sflag (!%p140_p9), [#allocation3], %s159_s6  ;;  %s309_s24 = scalar_lea.vmem (!%p140_p9), %s200_s10, 128 }
  0x12   : > { %p310_p11 = scmp.ne.s32.totalorder (!%p140_p9), %s200_s10, %s309_s24  ;;  %s372_s25 = smov (!%p140_p9), [#allocation2]  }
  0x13   : > { %v168_v0 = vld [vmem:[%s487_s1] sm:$0xff]  ;;  %v371_v1 = vmov 0   ;;  %s163_s28 = scalar_select %p162_p10, %s414_s16, 1  ;;  %vm183_vm0 = vcmask 261120  }
  0x14   : > { %308 = vset.pattern.permute.xlu0 %v371_v1  ;;  %v175_v2 = vld [vmem:[%s488_s2] sm:$0xff]  ;;  %p311_p12 = pnand %p310_p11, %p431_p5  ;;  %s313_s26 = sshll.u32 %s372_s25, 4  ;;  %s314_s26 = int_to_ptr.vmem [resolvable:$false] %s313_s26 }
  0x15   : > { %171 = vperm.xlu0 %308, %v168_v0   ;;  %s263_s29 = sshll.u32 %s163_s28, 2  ;;  %s315_s16 = scalar_lea.vmem %s314_s26, 256 }
  0x16   : > { %s165_s5 = scalar_lea.vmem %s486_s0, %s263_s29  ;;  %p312_p13 = pneg %p311_p12 }
  0x17   : > { %v166_v3 = vld [vmem:[%s165_s5] sm:$0xf]  ;;  %p316_p0 = scmp.lt.s32.totalorder %s200_s10, %s314_s26  ;;  %p317_p1 = scmp.lt.s32.totalorder %s315_s16, %s309_s24 }
  0x18   : > { %v167_v4 = vunpack.c.l.bf16 %v166_v3 }
  0x19   : > { %178 = vperm.xlu0 %308, %v175_v2   ;;  %p318_p2 = por %p317_p1, %p316_p0 }
  0x1b   : > { %p319_p3 = pnand %p318_p2, %p312_p13 }
  0x90   : > { %v172_v5 = vpop.permute.xlu0 %171 }
  0x91   : > { %v174_v6 = vmul.f32 %v172_v5, %v167_v4 }
  0x94   : > { %v179_v7 = vpop.permute.xlu0 %178 }
  0x95   : > { %v181_v8 = vadd.f32 %v179_v7, %v174_v6 }
  0x97   : > { %v182_v9 = vmax.f32 %v181_v8, 0.0 }
  0x99   : > { %184 = vst.msk [vmem:[%s161_s9] sm:$0xff] %vm183_vm0, %v182_v9 }
  0x9a   : > { %322 = shalt.err (!%p319_p3)
}
  0x9b   : > { %s323_s27 = scalar_lea.hbm %s197_s19, 128  ;;  %s327_s30 = scalar_lea.hbm %s489_s3, 256 }
  0x9c   : > { %p324_p4 = scmp.ne.s32.totalorder %s197_s19, %s323_s27  ;;  %p328_p9 = scmp.lt.s32.totalorder %s197_s19, %s489_s3 }
  0x9d   : > { %p329_p10 = scmp.lt.s32.totalorder %s327_s30, %s323_s27 }
  0x9e   : > { %p325_p7 = pnand %p324_p4, %p431_p5 }
  0x9f   : > { %p330_p11 = por %p329_p10, %p328_p9 }
  0xa0   : > { %p326_p8 = pneg %p325_p7 }
  0xa2   : > { %p331_p12 = pnand %p330_p11, %p326_p8 }
  0xa4   : > { %334 = shalt.err (!%p331_p12)
}
  0xa5   : > { %268 = dma.vmem_to_hbm [thread:$0]  (%p431_p5), %s200_s10, 128, %s197_s19, %s186_s20  }
  0xa6 PF: > { %p274_p13 = scmp.ge.s32.totalorder %s369_s15, 2  ;;  %s211_s6 = sand.u32 1, %s357_s12  }
  0xa7   : > { %s212_s7 = scalar_lea.sflag [#allocation3], %s211_s6 }
  0xa8   : > { %p271_p0 = pnand %p274_p13, %p435_p6 }
  0xaa   : > { %p272_p1 = pneg %p271_p0 }
  0xac   : > { %352 = dma.done.wait (%p272_p1), %s212_s7, 128  }
  0xad   : > { %354 = vsyncadd (%p272_p1), %s212_s7, 4294967168  ;;  %p13_p2 = scmp.ge.s32.totalorder %s418_s18, 4   ;;  %s492_s12 = smov %s361_s13 }
  0xae   : > { %s493_s13 = smov %s365_s14  ;;  %s494_s14 = smov %s429_s21 }
  0xaf   : > { %s495_s15 = smov %s418_s18  ;;  %15 = sbr.rel (!%p13_p2) target bundleno = 3 (0x3), region = 67 }
  0xb4   :  { %217 = vsyncpa [#allocation3], 1 }
  0xb5   :  { %219 = vsyncpa [#allocation3 + $0x1], 1 }

// kernel: deconv_block.3
= control target key start
LH: loop header
LB: loop body
LE: loop exit
PB: predicated region body
PF: predicated region fallthrough
CT: control target
= control target key end

     0   :  { %s428_s12 = smov 0   ;;  %s456_s0 = inlined_call_operand.vmem [shape: bf16[2,4,34], index: 0, kind: input, shape index: {}]   ;;  %s457_s1 = inlined_call_operand.vmem [shape: bf16[8,12], index: 1, kind: input, shape index: {}]   ;;  %s458_s2 = inlined_call_operand.vmem [shape: bf16[2,8,32], index: 2, kind: output, shape index: {0}]   ;;  %s459_s3 = inlined_call_operand.vmem [shape: f32[2,8,3], index: 3, kind: output, shape index: {1}]  }
   0x1 LB: > { %s362_s13 = sadd.s32 4294967295, %s401_s12   ;;  %p366_p0 = scmp.ge.s32.totalorder %s401_s12, 1  ;;  %s401_s12 = sphi %s428_s12, %s14_s12  }
   0x2   : > { %p139_p1 = scmp.lt.s32.totalorder %s401_s12, 3 }
   0x4   : > { %p140_p2 = pnand %p366_p0, %p139_p1 }
   0x5   : > { %p165_p3 = scmp.lt.s32.totalorder (!%p140_p2), %s362_s13, 1  ;;  %s406_s18 = smov (!%p140_p2), 127  }
   0x6   : > { %143 = sbr.rel (%p140_p2) target bundleno = 624 (0x270), region = 28  ;;  %s407_s19 = smov (!%p140_p2), 126  }
   0xb   : > { %v185_v0 = vlaneseq  ;;  %v403_v1 = vmov 1983009808   ;;  %s461_s13 = smov (!%p165_p3, %s362_s13), 1  ;;  %v404_v4 = vmov 0.0   ;;  %vm405_vm0 = vmmov 0  }
   0xc   : > { %v183_v2 = vunpack.c.l.s4 %v403_v1  ;;  %375 = vmatprep.subr.bf16.mxu0 %v404_v4  ;;  %s367_s14 = sshll.u32 %s461_s13, 1  ;;  %377 = vmatprep.mubr.msk.bf16.mxu0 %vm405_vm0, %v404_v4  ;;  %vm201_vm1 = vcmask 1041408   ;;  %vm205_vm2 = vcmask 1043456   ;;  %vm212_vm3 = vcmask 1045504   ;;  %v178_v17 = vld [vmem:[%s457_s1] sm:$0xf] }
   0xd   : > { %v186_v3 = vshrl.u32 %v185_v0, 7  ;;  %s168_s17 = scalar_lea.vmem %s456_s0, %s367_s14  ;;  %vm208_vm4 = vcmask 97280   ;;  %s368_s22 = sshll.u32 %s461_s13, 2  ;;  %vm258_vm5 = vcmask 261120   ;;  %vm256_vm6 = vcmask 257024  }
   0xe   : > { %v184_v5 = vunpack.c.0.s8 %v183_v2  ;;  %v179_v7 = vld [vmem:[%s168_s17] sm:$0x3]  ;;  %s172_s25 = scalar_lea.vmem %s458_s2, %s368_s22  ;;  %s369_s26 = sshll.u32 %s461_s13, 3  ;;  %vm272_vm7 = vcmask 7168   ;;  %vm274_vm8 = vcmask 15360   ;;  %vm276_vm9 = vcmask 23552  }
   0xf   : > { %v181_v8 = vcombine.low %v179_v7, %v179_v7  ;;  %s176_s29 = scalar_lea.vmem %s459_s3, %s369_s26 }
  0x10   : > { %v187_v6 = vsub.s32 %v184_v5, %v186_v3 }
  0x12   : > { %v195_v9 = vrot.slane %v179_v7, %v187_v6  ;;  %v188_v10 = vrot.slane %v181_v8, %v187_v6 }
  0x14   : > { %196 = vrot.lane.b32.xlu0 %v188_v10, %s406_s18  ;;  %v198_v11 = vcombine.low %v195_v9, %v195_v9 }
  0x18   : > { %199 = vrot.lane.b32.xlu0 %v198_v11, %s407_s19 }
  0x86   : > { %v197_v12 = vpop.permute.xlu0 %196 }
  0x87   : > { %v204_v13 = vsel %vm201_vm1, %v179_v7, %v197_v12 }
  0x8a   : > { %v200_v14 = vpop.permute.xlu0 %199 }
  0x8b   : > { %v207_v15 = vsel %vm205_vm2, %v204_v13, %v200_v14 }
  0x8c   : > { %v213_v16 = vsel %vm212_vm3, %v207_v15, 0 }
  0x8d   : > { %376 = vmatpush3.bf16.msra.mxu0 %v213_v16 }
  0x90   : > { %378 = vmatmul.mubr.msk.bf16.vlgmr.msra.gmra.mxu0 %vm208_vm4, %v178_v17 }
 0x150   : > { %v249_v18 = vpop.f32.mrf.mxu0 }
 0x151   : > { %v255_v19 = vpack.c.bf16 %v249_v18, %v249_v18  ;;  %v259_v20 = vsel %vm258_vm5, %v249_v18, 0.0 }
 0x152   : > { %260 = vadd.xlane.f32.xlu1 %v259_v20  ;;  %v379_v21 = vpop.f32.mrf.mxu0 }
 0x153   : > { %257 = vst.msk [vmem:[%s172_s25] sm:$0xf] %vm256_vm6, %v255_v19 }
 0x154   : > { %v252_v22 = vpop.f32.mrf.mxu0 }
 0x156   : > { %v380_v23 = vpop.f32.mrf.mxu0 }
 0x1db   : > { %v261_v24 = vpop.xlane.xlu1 %260 }
 0x1dc   : > { %v262_v25 = vmul.f32 0.03125, %v261_v24 }
 0x1de   : > { %v263_v26 = vsub.f32 %v249_v18, %v262_v25  ;;  %v270_v29 = vmul.f32 %v262_v25, %v261_v24 }
 0x1e0   : > { %v265_v27 = vmul.f32 %v263_v26, %v263_v26 }
 0x1e2   : > { %v266_v28 = vsel %vm258_vm5, %v265_v27, 0.0 }
 0x1e3   : > { %267 = vadd.xlane.f32.xlu1 %v266_v28 }
 0x26c   : > { %v268_v30 = vpop.xlane.xlu1 %267 }
 0x26d   : > { %v273_v31 = vsel %vm272_vm7, %v261_v24, %v268_v30 }
 0x26e   : > { %v275_v32 = vsel %vm274_vm8, %v273_v31, %v270_v29 }
 0x26f   : > { %277 = vst.msk [vmem:[%s176_s29] sm:$0xff] %vm276_vm9, %v275_v32 }
 0x270 PF: > { %s14_s12 = sadd.s32 1, %s401_s12  }
 0x271   : > { %p11_p4 = scmp.ge.s32.totalorder %s14_s12, 4  }
 0x273   :  { %13 = sbr.rel (!%p11_p4) target bundleno = 1 (0x1), region = 70 }

// kernel: deconv_block.4
= control target key start
LH: loop header
LB: loop body
LE: loop exit
PB: predicated region body
PF: predicated region fallthrough
CT: control target
= control target key end

     0   :  { %s671_s24 = smov 0   ;;  %s727_s0 = inlined_call_operand.vmem [shape: bf16[2,8,32], index: 0, kind: input, shape index: {}]   ;;  %s728_s1 = inlined_call_operand.vmem [shape: bf16[2,8,34], index: 1, kind: input, shape index: {}]   ;;  %s729_s2 = inlined_call_operand.vmem [shape: f32[8,1], index: 2, kind: input, shape index: {}]   ;;  %s730_s3 = inlined_call_operand.vmem [shape: f32[8,1], index: 3, kind: input, shape index: {}]   ;;  %s731_s4 = inlined_call_operand.vmem [shape: bf16[8,24], index: 4, kind: input, shape index: {}]   ;;  %s732_s5 = inlined_call_operand.vmem [shape: bf16[8,24], index: 5, kind: input, shape index: {}]   ;;  %s733_s6 = inlined_call_operand.vmem [shape: bf16[2,8,32], index: 6, kind: output, shape index: {0}]   ;;  %s734_s7 = inlined_call_operand.vmem [shape: f32[2,8,3], index: 7, kind: output, shape index: {1}]  }
   0x1 LB: > { %s565_s25 = sadd.s32 4294967295, %s623_s24   ;;  %p569_p0 = scmp.ge.s32.totalorder %s623_s24, 1  ;;  %s623_s24 = sphi %s671_s24, %s18_s24  }
   0x2   : > { %p248_p1 = scmp.lt.s32.totalorder %s623_s24, 3 }
   0x4   : > { %p249_p2 = pnand %p569_p0, %p248_p1 }
   0x5   : > { %p286_p3 = scmp.lt.s32.totalorder (!%p249_p2), %s565_s25, 1  ;;  %s626_s11 = smov (!%p249_p2), 126  }
   0x6   : > { %252 = sbr.rel (%p249_p2) target bundleno = 869 (0x365), region = 44  ;;  %s627_s15 = smov (!%p249_p2), 127  }
   0x7   : > { %s629_s16 = smov (!%p249_p2), 1  }
   0xb   : > { %v303_v0 = vld [vmem:[%s729_s2] sm:$0xff]  ;;  %v625_v1 = vmov 0   ;;  %s736_s25 = smov (!%p286_p3, %s565_s25), 1  ;;  %v628_v11 = vmov 0.0   ;;  %vm339_vm0 = vcmask 1043456   ;;  %vm630_vm1 = vmmov 0  }
   0xc   : > { %615 = vset.pattern.permute.xlu0 %v625_v1  ;;  %v304_v2 = vld [vmem:[%s730_s3] sm:$0xff]  ;;  %s688_s30 = sshll.u32 %s736_s25, 2  ;;  %585 = vmatprep.subr.bf16.mxu0 %v628_v11  ;;  %vm354_vm2 = vcmask 195584   ;;  %vm326_vm3 = vcmask 7168   ;;  %vm330_vm4 = vcmask 269312   ;;  %vm450_vm5 = vcmask 261120  }
   0xd   : > { %311 = vperm.xlu0 %615, %v303_v0   ;;  %s293_s10 = scalar_lea.vmem %s728_s1, %s688_s30  ;;  %s289_s14 = scalar_lea.vmem %s727_s0, %s688_s30  ;;  %593 = vmatprep.subr.bf16.mxu1 %v628_v11  ;;  %v306_v18 = vld [vmem:[%s732_s5] sm:$0xf]  ;;  %vm448_vm6 = vcmask 257024   ;;  %vm465_vm7 = vcmask 15360   ;;  %vm467_vm8 = vcmask 23552  }
   0xe   : > { %v332_v3 = vld [vmem:[%s293_s10] sm:$0xf]  ;;  %589 = vmatprep.mubr.msk.bf16.mxu0 %vm630_vm1, %v628_v11  ;;  %597 = vmatprep.mubr.msk.bf16.mxu1 %vm630_vm1, %v628_v11  ;;  %s297_s23 = scalar_lea.vmem %s733_s6, %s688_s30  ;;  %s573_s26 = sshll.u32 %s736_s25, 3 }
   0xf   : > { %v574_v4 = vcombine.low %v332_v3, %v332_v3  ;;  %v307_v5 = vld [vmem:[%s289_s14] sm:$0xf]  ;;  %s301_s29 = scalar_lea.vmem %s734_s7, %s573_s26 }
  0x10   : > { %v308_v6 = vunpack.c.l.bf16 %v307_v5  ;;  %v305_v27 = vld [vmem:[%s731_s4] sm:$0xf] }
  0x11   : > { %317 = vperm.xlu0 %615, %v304_v2  }
  0x15   : > { %348 = vrot.lane.b32.xlu0 %v574_v4, %s626_s11 }
  0x19   : > { %346 = vrot.lane.b32.xlu0 %v574_v4, %s627_s15 }
  0x88   : > { %v312_v7 = vpop.permute.xlu0 %311 }
  0x89   : > { %v314_v8 = vmul.f32 %v312_v7, %v308_v6 }
  0x8c   : > { %v318_v9 = vpop.permute.xlu0 %317 }
  0x8d   : > { %v320_v10 = vadd.f32 %v318_v9, %v314_v8 }
  0x8f   : > { %v321_v12 = vmax.f32 %v320_v10, 0.0 }
  0x90   : > { %v349_v13 = vpop.permute.xlu0 %348 }
  0x91   : > { %v322_v14 = vpack.c.bf16 %v321_v12, %v321_v12  ;;  %v359_v15 = vsel %vm339_vm0, %v349_v13, 0 }
  0x92   : > { %586 = vmatpush3.bf16.msra.mxu0 %v359_v15 }
  0x93   : > { %324 = vrot.lane.b32.xlu1 %v322_v14, %s629_s16  ;;  %587 = vmatprep.subr.bf16.mxu0 %v628_v11 }
  0x94   : > { %v347_v16 = vpop.permute.xlu0 %346 }
  0x95   : > { %v352_v17 = vsel %vm339_vm0, %v332_v3, %v347_v16 }
  0x96   : > { %588 = vmatpush3.bf16.msra.mxu0 %v352_v17 }
  0x99   : > { %590 = vmatmul.mubr.msk.bf16.vlgmr.msra.gmra.mxu0 %vm354_vm2, %v306_v18 }
 0x105   : > { %v325_v19 = vpop.permute.xlu1 %324 }
 0x106   : > { %v329_v20 = vsel %vm326_vm3, 0, %v325_v19 }
 0x107   : > { %v331_v21 = vsel %vm330_vm4, %v329_v20, 0 }
 0x108   : > { %337 = vrot.lane.b32.xlu1 %v331_v21, %s626_s11  ;;  %v334_v22 = vrot.slane %v331_v21, 4 }
 0x10c   : > { %335 = vrot.lane.b32.xlu1 %v334_v22, %s627_s15 }
 0x159   : > { %v395_v28 = vpop.f32.mrf.mxu0 }
 0x15b   : > { %v591_v29 = vpop.f32.mrf.mxu0 }
 0x15d   : > { %v398_v30 = vpop.f32.mrf.mxu0 }
 0x15f   : > { %v592_v31 = vpop.f32.mrf.mxu0 }
 0x17a   : > { %v338_v23 = vpop.permute.xlu1 %337 }
 0x17b   : > { %v405_v24 = vsel %vm339_vm0, %v338_v23, 0 }
 0x17c   : > { %594 = vmatpush3.bf16.msra.mxu1 %v405_v24 }
 0x17d   : > { %595 = vmatprep.subr.bf16.mxu1 %v628_v11 }
 0x17e   : > { %v336_v25 = vpop.permute.xlu1 %335 }
 0x17f   : > { %v341_v26 = vsel %vm339_vm0, %v331_v21, %v336_v25 }
 0x180   : > { %596 = vmatpush3.bf16.msra.mxu1 %v341_v26 }
 0x183   : > { %598 = vmatmul.mubr.msk.bf16.vlgmr.msra.gmra.mxu1 %vm354_vm2, %v305_v27 }
 0x243   : > { %v441_v32 = vpop.f32.mrf.mxu1 }
 0x244   : > { %v442_v33 = vadd.f32 %v441_v32, %v395_v28 }
 0x245   : > { %v599_v34 = vpop.f32.mrf.mxu1 }
 0x246   : > { %v447_v35 = vpack.c.bf16 %v442_v33, %v442_v33  ;;  %v451_v36 = vsel %vm450_vm5, %v442_v33, 0.0 }
 0x247   : > { %452 = vadd.xlane.f32.xlu1 %v451_v36  ;;  %v444_v37 = vpop.f32.mrf.mxu1 }
 0x248   : > { %449 = vst.msk [vmem:[%s297_s23] sm:$0xf] %vm448_vm6, %v447_v35 }
 0x249   : > { %v600_v38 = vpop.f32.mrf.mxu1 }
 0x2d0   : > { %v453_v39 = vpop.xlane.xlu1 %452 }
 0x2d1   : > { %v454_v40 = vmul.f32 0.03125, %v453_v39 }
 0x2d3   : > { %v455_v41 = vsub.f32 %v442_v33, %v454_v40  ;;  %v462_v44 = vmul.f32 %v454_v40, %v453_v39 }
 0x2d5   : > { %v457_v42 = vmul.f32 %v455_v41, %v455_v41 }
 0x2d7   : > { %v458_v43 = vsel %vm450_vm5, %v457_v42, 0.0 }
 0x2d8   : > { %459 = vadd.xlane.f32.xlu0 %v458_v43 }
 0x361   : > { %v460_v45 = vpop.xlane.xlu0 %459 }
 0x362   : > { %v464_v46 = vsel %vm326_vm3, %v453_v39, %v460_v45 }
 0x363   : > { %v466_v47 = vsel %vm465_vm7, %v464_v46, %v462_v44 }
 0x364   : > { %468 = vst.msk [vmem:[%s301_s29] sm:$0xff] %vm467_vm8, %v466_v47 }
 0x365 PF: > { %s18_s24 = sadd.s32 1, %s623_s24  }
 0x366   : > { %p15_p4 = scmp.ge.s32.totalorder %s18_s24, 4  }
 0x368   :  { %17 = sbr.rel (!%p15_p4) target bundleno = 1 (0x1), region = 89 }

</bundles_post_ra>
